<compile_context>
chip_gen: v6e
topology: v6e:2x2x1
jax: 0.10.0
libtpu: 0.0.40
codegen_flags: <defaults>
</compile_context>

<pallas_src>
import functools

import jax
import jax.numpy as jnp
from jax.experimental import pallas as pl
from jax.experimental.pallas import tpu as pltpu

LANE = 128


def _round_up(x, m):
    return ((x + m - 1) // m) * m


def _tpu_generation():
    """Return (vmem_capacity_bytes, has_two_tensorcores) with safe fallbacks."""
    vmem_cap = None
    two_tc = False
    try:
        info = pltpu.get_tpu_info()
        cap = int(getattr(info, "vmem_capacity_bytes", 0))
        vmem_cap = cap if cap > 0 else None
    except Exception:
        vmem_cap = None
    try:
        kind = jax.devices()[0].device_kind.lower()
    except Exception:
        kind = ""
    if "v7" in kind:
        two_tc = True
        vmem_cap = min(vmem_cap or (64 << 20), 64 << 20)   # 64 MiB per TC on v7x
    if vmem_cap is None:
        vmem_cap = 64 << 20   # unknown chip: assume the smallest per-core VMEM
    return vmem_cap, two_tc


def _mlp_kernel(n_linear, compute_dtype, *refs):
    """refs = (x_ref, w0, b0, ..., w{L-1}, b{L-1}, out_ref).

    ReLU follows every linear except the first (lm_head) and the last (output
    projection), matching the PyTorch ModuleList ordering. For
    no_hidden_layers == 0 (layers = [lm_head, out]) no activation is applied.
    """
    x_ref = refs[0]
    out_ref = refs[-1]
    params = refs[1:-1]

    h = x_ref[...]                                   # (tm, d0), f32 or bf16
    for i in range(n_linear):
        w = params[2 * i][...]                       # (din, dout_pad), bf16
        b = params[2 * i + 1][...]                   # (1, dout_pad), f32
        h = jnp.dot(h.astype(compute_dtype), w,
                    preferred_element_type=jnp.float32) + b
        if 1 <= i < n_linear - 1:
            h = jnp.maximum(h, 0.0)                  # Dropout (eval identity) + ReLU
    out_ref[...] = h.astype(out_ref.dtype)


def prepare_distance_head_params(weights, biases, compute_dtype=jnp.bfloat16):
    """Pad/cast parameters ONCE, hoisted out of the per-call forward path.

    weights[i]: (in_i, out_i)  (PyTorch [out, in] pre-transposed).
    biases[i]:  (out_i,) or (1, out_i).
    Every *output* feature dim is zero-padded to a multiple of 128 (lane-dense
    vregs, full MXU width, unmasked stores). The first layer's input dim is
    left unpadded so x can stream straight from HBM without a wrapper pad/cast.
    """
    n_linear = len(weights)
    dims = [weights[0].shape[0]] + [w.shape[1] for w in weights]
    pdims = [dims[0]] + [_round_up(d, LANE) for d in dims[1:]]

    flat = []
    for i, (w, b) in enumerate(zip(weights, biases)):
        wp = jnp.pad(w, ((0, pdims[i] - w.shape[0]), (0, pdims[i + 1] - w.shape[1])))
        bp = jnp.pad(jnp.reshape(b, (1, -1)), ((0, 0), (0, pdims[i + 1] - dims[i + 1])))
        flat.append(wp.astype(compute_dtype))        # bf16 MXU operand (half DMA bytes)
        flat.append(bp.astype(jnp.float32))          # bias-add stays f32

    return {
        "flat_params": flat,
        "weights": list(weights),
        "biases": list(biases),
        "dims": dims,
        "pdims": pdims,
        "n_linear": n_linear,
        "compute_dtype": compute_dtype,
    }


def distance_head_forward_prepared(x, prepared, *, tm_max=512,
                                   force_pallas=False, small_m_threshold=256):
    """x: (..., input_dim). Returns (..., no_bins) in float32."""
    orig_lead = x.shape[:-1]
    input_dim = x.shape[-1]
    dims = prepared["dims"]
    pdims = prepared["pdims"]
    n_linear = prepared["n_linear"]
    compute_dtype = prepared["compute_dtype"]
    no_bins = dims[-1]
    assert input_dim == dims[0], (input_dim, dims[0])

    x2d = x.reshape(-1, input_dim)
    M = x2d.shape[0]

    # Small-M fast path: for tiny batches the wrapper + pallas_call fixed
    # overhead exceeds the kernel time; let XLA fuse the whole MLP instead.
    if not force_pallas and M < small_m_threshold:
        h = x2d.astype(jnp.float32)
        for i, (w, b) in enumerate(zip(prepared["weights"], prepared["biases"])):
            h = h @ w.astype(jnp.float32) + jnp.reshape(b, (1, -1)).astype(jnp.float32)
            if 1 <= i < n_linear - 1:
                h = jnp.maximum(h, 0.0)
        return h.reshape(*orig_lead, no_bins)

    # ---- per-generation VMEM budget ----
    vmem_cap, two_tc = _tpu_generation()
    budget = (vmem_cap * 3) // 4

    c_isz = jnp.dtype(compute_dtype).itemsize
    x_isz = jnp.dtype(x2d.dtype).itemsize
    out_isz = jnp.dtype(jnp.bfloat16).itemsize

    # Params are single-buffered (constant index map -> never re-fetched) ->
    # counted once; streamed x / out are double-buffered.
    params_bytes = sum(pdims[i] * pdims[i + 1] * c_isz + pdims[i + 1] * 4
                       for i in range(n_linear))

    def vmem_bytes(rows):
        io = 2 * rows * pdims[0] * x_isz + 2 * rows * pdims[-1] * out_isz
        live = 3 * rows * max(pdims) * 4             # live f32 intermediates
        return io + params_bytes + live

    # ---- row tile: large, multiple of 8. Only split into >= 2 grid steps on
    # chips with two TensorCores (v7x); on single-TC v5e/v6e the grid is a
    # serial loop and the split is pure per-step overhead. ----
    tm = max(8, min(tm_max, _round_up(M, 8)))
    if two_tc and M >= 16 and pl.cdiv(M, tm) < 2:
        tm = max(8, _round_up(pl.cdiv(M, 2), 8))
    while tm > 8 and vmem_bytes(tm) > budget:
        tm = max(8, _round_up(tm // 2, 8))

    M_pad = _round_up(max(M, tm), tm)
    # Rows-only pad (no lane pad, no dtype cast); skipped entirely when M % tm == 0.
    x_pad = x2d if M_pad == M else jnp.pad(x2d, ((0, M_pad - M), (0, 0)))

    p_out = pdims[-1]
    flat_params = prepared["flat_params"]

    flops = 2 * M_pad * sum(pdims[i] * pdims[i + 1] for i in range(n_linear))
    bytes_accessed = (x_pad.size * x_isz
                      + sum(int(p.size) * p.dtype.itemsize for p in flat_params)
                      + M_pad * p_out * out_isz)
    vmem_limit = int(min(vmem_cap - (2 << 20),
                         max(vmem_bytes(tm) + (8 << 20), 32 << 20)))

    kernel = functools.partial(_mlp_kernel, n_linear, compute_dtype)

    def call(single_buffer_params):
        in_specs = [pl.BlockSpec((tm, pdims[0]), lambda i: (i, 0))]
        for p in flat_params:
            if single_buffer_params:
                in_specs.append(pl.BlockSpec(p.shape, lambda i: (0, 0),
                                             pipeline_mode=pl.Buffered(1)))
            else:
                in_specs.append(pl.BlockSpec(p.shape, lambda i: (0, 0)))
        # lane-dense bf16 output: unmasked stores, half the writeback bytes of f32.
        out_spec = pl.BlockSpec((tm, p_out), lambda i: (i, 0))
        return pl.pallas_call(
            kernel,
            out_shape=jax.ShapeDtypeStruct((M_pad, p_out), jnp.bfloat16),
            grid_spec=pltpu.PrefetchScalarGridSpec(
                num_scalar_prefetch=0,
                grid=(M_pad // tm,),
                in_specs=in_specs,
                out_specs=out_spec,
            ),
            compiler_params=pltpu.CompilerParams(
                dimension_semantics=("parallel",),
                vmem_limit_bytes=vmem_limit,
            ),
            cost_estimate=pl.CostEstimate(
                flops=flops, transcendentals=0, bytes_accessed=bytes_accessed),
        )(x_pad, *flat_params)

    try:
        out = call(single_buffer_params=True)
    except Exception:
        # Fallback if this Pallas build rejects Buffered(1) pipeline_mode.
        out = call(single_buffer_params=False)

    out = out[:M, :no_bins].astype(jnp.float32)
    return out.reshape(*orig_lead, no_bins)


def distance_prediction_head_forward(x, weights, biases, **kwargs):
    """One-shot convenience wrapper (pads/casts params every call; prefer
    prepare_distance_head_params + distance_head_forward_prepared for reuse)."""
    prepared = prepare_distance_head_params(weights, biases)
    return distance_head_forward_prepared(x, prepared, **kwargs)


def _init_params(key, input_dim, token_dim, hidden_dim, no_bins, no_hidden_layers):
    """Deterministic synthetic parameters (PyTorch Linear shapes, pre-transposed)."""
    dims = [input_dim, token_dim]
    if no_hidden_layers == 0:
        dims.append(no_bins)
    else:
        dims += [hidden_dim] * no_hidden_layers
        dims.append(no_bins)

    weights, biases = [], []
    for i in range(len(dims) - 1):
        din, dout = dims[i], dims[i + 1]
        key, kw, kb = jax.random.split(key, 3)
        # PyTorch layout is [out, in]; store transposed (in, out) for x @ W.
        weights.append(jax.random.normal(kw, (din, dout), jnp.float32) * 0.05)
        biases.append(jax.random.normal(kb, (dout,), jnp.float32) * 0.05)
    return weights, biases


def _reference_forward(x, weights, biases):
    """Pure-JAX f32 reference of the PyTorch forward (eval mode)."""
    h = x.reshape(-1, x.shape[-1]).astype(jnp.float32)
    n = len(weights)
    for i, (w, b) in enumerate(zip(weights, biases)):
        h = h @ w + jnp.reshape(b, (1, -1))
        if 1 <= i < n - 1:
            h = jnp.maximum(h, 0.0)
    return h.reshape(*x.shape[:-1], weights[-1].shape[1])


if __name__ == "__main__":
    # Small shapes implied by the module: x has trailing dim = lm_head input_dim.
    batch, seq = 2, 8
    input_dim, token_dim = 32, 64
    hidden_dim, no_bins = 32, 16
    no_hidden_layers = 2

    key = jax.random.PRNGKey(0)
    key, kx = jax.random.split(key)
    x = jax.random.normal(kx, (batch, seq, input_dim), jnp.float32)

    weights, biases = _init_params(
        key, input_dim, token_dim, hidden_dim, no_bins, no_hidden_layers)

    prepared = prepare_distance_head_params(weights, biases)

    # Force the Pallas path (small M would otherwise take the XLA fast path).
    out = distance_head_forward_prepared(x, prepared, force_pallas=True)
    out = jax.block_until_ready(out)

    ref = _reference_forward(x, weights, biases)
    assert out.shape == (batch, seq, no_bins), out.shape
    # bf16 MXU operands / bf16 output with f32 accumulation -> loose tolerance.
    assert jnp.allclose(out, ref, atol=2e-2, rtol=2e-2), float(
        jnp.max(jnp.abs(out - ref)))

    # Auto-dispatch path (small-M XLA fast path) must agree with the reference too.
    out_fast = jax.block_until_ready(distance_head_forward_prepared(x, prepared))
    assert out_fast.shape == (batch, seq, no_bins), out_fast.shape
    assert jnp.allclose(out_fast, ref, atol=1e-4, rtol=1e-4), float(
        jnp.max(jnp.abs(out_fast - ref)))

    print("KERNEL_OK")
</pallas_src>

<mosaic_0001>
module attributes {stable_mosaic.version = 11 : i64} {
  func.func @_mlp_kernel(%arg0: i32, %arg1: memref<16x32xf32, #tpu.memory_space<vmem>>, %arg2: memref<32x128xbf16, #tpu.memory_space<vmem>>, %arg3: memref<1x128xf32, #tpu.memory_space<vmem>>, %arg4: memref<128x128xbf16, #tpu.memory_space<vmem>>, %arg5: memref<1x128xf32, #tpu.memory_space<vmem>>, %arg6: memref<128x128xbf16, #tpu.memory_space<vmem>>, %arg7: memref<1x128xf32, #tpu.memory_space<vmem>>, %arg8: memref<128x128xbf16, #tpu.memory_space<vmem>>, %arg9: memref<1x128xf32, #tpu.memory_space<vmem>>, %arg10: memref<16x128xbf16, #tpu.memory_space<vmem>>) attributes {dimension_semantics = [#tpu.dimension_semantics<parallel>], iteration_bounds = array<i64: 1>, scalar_prefetch = 0 : i64, scratch_operands = 0 : i64, tpu.core_type = #tpu.core_type<tc>, window_params = [{transform_indices = @transform_0, window_bounds = array<i64: 16, 32>}, {pipeline_mode = #tpu.pipeline_mode<synchronous>, transform_indices = @transform_1, window_bounds = array<i64: 32, 128>}, {pipeline_mode = #tpu.pipeline_mode<synchronous>, transform_indices = @transform_2, window_bounds = array<i64: 1, 128>}, {pipeline_mode = #tpu.pipeline_mode<synchronous>, transform_indices = @transform_3, window_bounds = array<i64: 128, 128>}, {pipeline_mode = #tpu.pipeline_mode<synchronous>, transform_indices = @transform_4, window_bounds = array<i64: 1, 128>}, {pipeline_mode = #tpu.pipeline_mode<synchronous>, transform_indices = @transform_5, window_bounds = array<i64: 128, 128>}, {pipeline_mode = #tpu.pipeline_mode<synchronous>, transform_indices = @transform_6, window_bounds = array<i64: 1, 128>}, {pipeline_mode = #tpu.pipeline_mode<synchronous>, transform_indices = @transform_7, window_bounds = array<i64: 128, 128>}, {pipeline_mode = #tpu.pipeline_mode<synchronous>, transform_indices = @transform_8, window_bounds = array<i64: 1, 128>}, {transform_indices = @transform_9, window_bounds = array<i64: 16, 128>}]} {
    %c0 = arith.constant 0 : index
    %c0_0 = arith.constant 0 : index
    %0 = vector.load %arg1[%c0, %c0_0] : memref<16x32xf32, #tpu.memory_space<vmem>>, vector<16x32xf32>
    %c0_1 = arith.constant 0 : index
    %c0_2 = arith.constant 0 : index
    %1 = vector.load %arg2[%c0_1, %c0_2] : memref<32x128xbf16, #tpu.memory_space<vmem>>, vector<32x128xbf16>
    %c0_3 = arith.constant 0 : index
    %c0_4 = arith.constant 0 : index
    %2 = vector.load %arg3[%c0_3, %c0_4] : memref<1x128xf32, #tpu.memory_space<vmem>>, vector<1x128xf32>
    %3 = arith.truncf %0 : vector<16x32xf32> to vector<16x32xbf16>
    %cst = arith.constant dense<0.000000e+00> : vector<16x128xf32>
    %4 = tpu.matmul %3, %1, %cst {dimension_numbers = #tpu.dot_dimension_numbers<[1], [0], [0], [1], [0, 0, 1, 1], [], []>} : vector<16x32xbf16>, vector<32x128xbf16>, vector<16x128xf32> -> vector<16x128xf32>
    %5 = vector.broadcast %2 : vector<1x128xf32> to vector<16x128xf32>
    %6 = arith.addf %4, %5 : vector<16x128xf32>
    %c0_5 = arith.constant 0 : index
    %c0_6 = arith.constant 0 : index
    %7 = vector.load %arg4[%c0_5, %c0_6] : memref<128x128xbf16, #tpu.memory_space<vmem>>, vector<128x128xbf16>
    %c0_7 = arith.constant 0 : index
    %c0_8 = arith.constant 0 : index
    %8 = vector.load %arg5[%c0_7, %c0_8] : memref<1x128xf32, #tpu.memory_space<vmem>>, vector<1x128xf32>
    %9 = arith.truncf %6 : vector<16x128xf32> to vector<16x128xbf16>
    %cst_9 = arith.constant dense<0.000000e+00> : vector<16x128xf32>
    %10 = tpu.matmul %9, %7, %cst_9 {dimension_numbers = #tpu.dot_dimension_numbers<[1], [0], [0], [1], [0, 0, 1, 1], [], []>} : vector<16x128xbf16>, vector<128x128xbf16>, vector<16x128xf32> -> vector<16x128xf32>
    %11 = vector.broadcast %8 : vector<1x128xf32> to vector<16x128xf32>
    %12 = arith.addf %10, %11 : vector<16x128xf32>
    %cst_10 = arith.constant 0.000000e+00 : f32
    %13 = vector.broadcast %cst_10 : f32 to vector<16x128xf32>
    %14 = arith.maximumf %12, %13 : vector<16x128xf32>
    %c0_11 = arith.constant 0 : index
    %c0_12 = arith.constant 0 : index
    %15 = vector.load %arg6[%c0_11, %c0_12] : memref<128x128xbf16, #tpu.memory_space<vmem>>, vector<128x128xbf16>
    %c0_13 = arith.constant 0 : index
    %c0_14 = arith.constant 0 : index
    %16 = vector.load %arg7[%c0_13, %c0_14] : memref<1x128xf32, #tpu.memory_space<vmem>>, vector<1x128xf32>
    %17 = arith.truncf %14 : vector<16x128xf32> to vector<16x128xbf16>
    %cst_15 = arith.constant dense<0.000000e+00> : vector<16x128xf32>
    %18 = tpu.matmul %17, %15, %cst_15 {dimension_numbers = #tpu.dot_dimension_numbers<[1], [0], [0], [1], [0, 0, 1, 1], [], []>} : vector<16x128xbf16>, vector<128x128xbf16>, vector<16x128xf32> -> vector<16x128xf32>
    %19 = vector.broadcast %16 : vector<1x128xf32> to vector<16x128xf32>
    %20 = arith.addf %18, %19 : vector<16x128xf32>
    %cst_16 = arith.constant 0.000000e+00 : f32
    %21 = vector.broadcast %cst_16 : f32 to vector<16x128xf32>
    %22 = arith.maximumf %20, %21 : vector<16x128xf32>
    %c0_17 = arith.constant 0 : index
    %c0_18 = arith.constant 0 : index
    %23 = vector.load %arg8[%c0_17, %c0_18] : memref<128x128xbf16, #tpu.memory_space<vmem>>, vector<128x128xbf16>
    %c0_19 = arith.constant 0 : index
    %c0_20 = arith.constant 0 : index
    %24 = vector.load %arg9[%c0_19, %c0_20] : memref<1x128xf32, #tpu.memory_space<vmem>>, vector<1x128xf32>
    %25 = arith.truncf %22 : vector<16x128xf32> to vector<16x128xbf16>
    %cst_21 = arith.constant dense<0.000000e+00> : vector<16x128xf32>
    %26 = tpu.matmul %25, %23, %cst_21 {dimension_numbers = #tpu.dot_dimension_numbers<[1], [0], [0], [1], [0, 0, 1, 1], [], []>} : vector<16x128xbf16>, vector<128x128xbf16>, vector<16x128xf32> -> vector<16x128xf32>
    %27 = vector.broadcast %24 : vector<1x128xf32> to vector<16x128xf32>
    %28 = arith.addf %26, %27 : vector<16x128xf32>
    %29 = arith.truncf %28 : vector<16x128xf32> to vector<16x128xbf16>
    %c0_22 = arith.constant 0 : index
    %c0_23 = arith.constant 0 : index
    %30 = vector.load %arg10[%c0_22, %c0_23] : memref<16x128xbf16, #tpu.memory_space<vmem>>, vector<16x128xbf16>
    tpu.vector_store %arg10[%c0_22, %c0_23], %29 {strides = array<i32>} : memref<16x128xbf16, #tpu.memory_space<vmem>>, vector<16x128xbf16>,
    return
  }
  func.func @transform_0(%arg0: i32) -> (i32, i32) {
    %c0_i32 = arith.constant 0 : i32
    %c0_i32_0 = arith.constant 0 : i32
    return %arg0, %c0_i32 : i32, i32
  }
  func.func @transform_1(%arg0: i32) -> (i32, i32) {
    %c0_i32 = arith.constant 0 : i32
    %c0_i32_0 = arith.constant 0 : i32
    %c0_i32_1 = arith.constant 0 : i32
    return %c0_i32, %c0_i32_0 : i32, i32
  }
  func.func @transform_2(%arg0: i32) -> (i32, i32) {
    %c0_i32 = arith.constant 0 : i32
    %c0_i32_0 = arith.constant 0 : i32
    %c0_i32_1 = arith.constant 0 : i32
    return %c0_i32, %c0_i32_0 : i32, i32
  }
  func.func @transform_3(%arg0: i32) -> (i32, i32) {
    %c0_i32 = arith.constant 0 : i32
    %c0_i32_0 = arith.constant 0 : i32
    %c0_i32_1 = arith.constant 0 : i32
    return %c0_i32, %c0_i32_0 : i32, i32
  }
  func.func @transform_4(%arg0: i32) -> (i32, i32) {
    %c0_i32 = arith.constant 0 : i32
    %c0_i32_0 = arith.constant 0 : i32
    %c0_i32_1 = arith.constant 0 : i32
    return %c0_i32, %c0_i32_0 : i32, i32
  }
  func.func @transform_5(%arg0: i32) -> (i32, i32) {
    %c0_i32 = arith.constant 0 : i32
    %c0_i32_0 = arith.constant 0 : i32
    %c0_i32_1 = arith.constant 0 : i32
    return %c0_i32, %c0_i32_0 : i32, i32
  }
  func.func @transform_6(%arg0: i32) -> (i32, i32) {
    %c0_i32 = arith.constant 0 : i32
    %c0_i32_0 = arith.constant 0 : i32
    %c0_i32_1 = arith.constant 0 : i32
    return %c0_i32, %c0_i32_0 : i32, i32
  }
  func.func @transform_7(%arg0: i32) -> (i32, i32) {
    %c0_i32 = arith.constant 0 : i32
    %c0_i32_0 = arith.constant 0 : i32
    %c0_i32_1 = arith.constant 0 : i32
    return %c0_i32, %c0_i32_0 : i32, i32
  }
  func.func @transform_8(%arg0: i32) -> (i32, i32) {
    %c0_i32 = arith.constant 0 : i32
    %c0_i32_0 = arith.constant 0 : i32
    %c0_i32_1 = arith.constant 0 : i32
    return %c0_i32, %c0_i32_0 : i32, i32
  }
  func.func @transform_9(%arg0: i32) -> (i32, i32) {
    %c0_i32 = arith.constant 0 : i32
    %c0_i32_0 = arith.constant 0 : i32
    return %arg0, %c0_i32 : i32, i32
  }
}

module attributes {stable_mosaic.version = 11 : i64} {
  func.func @_mlp_kernel(%arg0: i32, %arg1: memref<16x32xf32, #tpu.memory_space<vmem>>, %arg2: memref<32x128xbf16, #tpu.memory_space<vmem>>, %arg3: memref<1x128xf32, #tpu.memory_space<vmem>>, %arg4: memref<128x128xbf16, #tpu.memory_space<vmem>>, %arg5: memref<1x128xf32, #tpu.memory_space<vmem>>, %arg6: memref<128x128xbf16, #tpu.memory_space<vmem>>, %arg7: memref<1x128xf32, #tpu.memory_space<vmem>>, %arg8: memref<128x128xbf16, #tpu.memory_space<vmem>>, %arg9: memref<1x128xf32, #tpu.memory_space<vmem>>, %arg10: memref<16x128xbf16, #tpu.memory_space<vmem>>) attributes {dimension_semantics = [#tpu.dimension_semantics<parallel>], iteration_bounds = array<i64: 1>, scalar_prefetch = 0 : i64, scratch_operands = 0 : i64, tpu.core_type = #tpu.core_type<tc>, window_params = [{transform_indices = @transform_0, window_bounds = array<i64: 16, 32>}, {pipeline_mode = #tpu.pipeline_mode<synchronous>, transform_indices = @transform_1, window_bounds = array<i64: 32, 128>}, {pipeline_mode = #tpu.pipeline_mode<synchronous>, transform_indices = @transform_2, window_bounds = array<i64: 1, 128>}, {pipeline_mode = #tpu.pipeline_mode<synchronous>, transform_indices = @transform_3, window_bounds = array<i64: 128, 128>}, {pipeline_mode = #tpu.pipeline_mode<synchronous>, transform_indices = @transform_4, window_bounds = array<i64: 1, 128>}, {pipeline_mode = #tpu.pipeline_mode<synchronous>, transform_indices = @transform_5, window_bounds = array<i64: 128, 128>}, {pipeline_mode = #tpu.pipeline_mode<synchronous>, transform_indices = @transform_6, window_bounds = array<i64: 1, 128>}, {pipeline_mode = #tpu.pipeline_mode<synchronous>, transform_indices = @transform_7, window_bounds = array<i64: 128, 128>}, {pipeline_mode = #tpu.pipeline_mode<synchronous>, transform_indices = @transform_8, window_bounds = array<i64: 1, 128>}, {transform_indices = @transform_9, window_bounds = array<i64: 16, 128>}]} {
    %c0 = arith.constant 0 : index
    %c0_0 = arith.constant 0 : index
    %0 = vector.load %arg1[%c0, %c0_0] : memref<16x32xf32, #tpu.memory_space<vmem>>, vector<16x32xf32>
    %c0_1 = arith.constant 0 : index
    %c0_2 = arith.constant 0 : index
    %1 = vector.load %arg2[%c0_1, %c0_2] : memref<32x128xbf16, #tpu.memory_space<vmem>>, vector<32x128xbf16>
    %c0_3 = arith.constant 0 : index
    %c0_4 = arith.constant 0 : index
    %2 = vector.load %arg3[%c0_3, %c0_4] : memref<1x128xf32, #tpu.memory_space<vmem>>, vector<1x128xf32>
    %3 = arith.truncf %0 : vector<16x32xf32> to vector<16x32xbf16>
    %cst = arith.constant dense<0.000000e+00> : vector<16x128xf32>
    %4 = tpu.matmul %3, %1, %cst {dimension_numbers = #tpu.dot_dimension_numbers<[1], [0], [0], [1], [0, 0, 1, 1], [], []>} : vector<16x32xbf16>, vector<32x128xbf16>, vector<16x128xf32> -> vector<16x128xf32>
    %5 = vector.broadcast %2 : vector<1x128xf32> to vector<16x128xf32>
    %6 = arith.addf %4, %5 : vector<16x128xf32>
    %c0_5 = arith.constant 0 : index
    %c0_6 = arith.constant 0 : index
    %7 = vector.load %arg4[%c0_5, %c0_6] : memref<128x128xbf16, #tpu.memory_space<vmem>>, vector<128x128xbf16>
    %c0_7 = arith.constant 0 : index
    %c0_8 = arith.constant 0 : index
    %8 = vector.load %arg5[%c0_7, %c0_8] : memref<1x128xf32, #tpu.memory_space<vmem>>, vector<1x128xf32>
    %9 = arith.truncf %6 : vector<16x128xf32> to vector<16x128xbf16>
    %cst_9 = arith.constant dense<0.000000e+00> : vector<16x128xf32>
    %10 = tpu.matmul %9, %7, %cst_9 {dimension_numbers = #tpu.dot_dimension_numbers<[1], [0], [0], [1], [0, 0, 1, 1], [], []>} : vector<16x128xbf16>, vector<128x128xbf16>, vector<16x128xf32> -> vector<16x128xf32>
    %11 = vector.broadcast %8 : vector<1x128xf32> to vector<16x128xf32>
    %12 = arith.addf %10, %11 : vector<16x128xf32>
    %cst_10 = arith.constant 0.000000e+00 : f32
    %13 = vector.broadcast %cst_10 : f32 to vector<16x128xf32>
    %14 = arith.maximumf %12, %13 : vector<16x128xf32>
    %c0_11 = arith.constant 0 : index
    %c0_12 = arith.constant 0 : index
    %15 = vector.load %arg6[%c0_11, %c0_12] : memref<128x128xbf16, #tpu.memory_space<vmem>>, vector<128x128xbf16>
    %c0_13 = arith.constant 0 : index
    %c0_14 = arith.constant 0 : index
    %16 = vector.load %arg7[%c0_13, %c0_14] : memref<1x128xf32, #tpu.memory_space<vmem>>, vector<1x128xf32>
    %17 = arith.truncf %14 : vector<16x128xf32> to vector<16x128xbf16>
    %cst_15 = arith.constant dense<0.000000e+00> : vector<16x128xf32>
    %18 = tpu.matmul %17, %15, %cst_15 {dimension_numbers = #tpu.dot_dimension_numbers<[1], [0], [0], [1], [0, 0, 1, 1], [], []>} : vector<16x128xbf16>, vector<128x128xbf16>, vector<16x128xf32> -> vector<16x128xf32>
    %19 = vector.broadcast %16 : vector<1x128xf32> to vector<16x128xf32>
    %20 = arith.addf %18, %19 : vector<16x128xf32>
    %cst_16 = arith.constant 0.000000e+00 : f32
    %21 = vector.broadcast %cst_16 : f32 to vector<16x128xf32>
    %22 = arith.maximumf %20, %21 : vector<16x128xf32>
    %c0_17 = arith.constant 0 : index
    %c0_18 = arith.constant 0 : index
    %23 = vector.load %arg8[%c0_17, %c0_18] : memref<128x128xbf16, #tpu.memory_space<vmem>>, vector<128x128xbf16>
    %c0_19 = arith.constant 0 : index
    %c0_20 = arith.constant 0 : index
    %24 = vector.load %arg9[%c0_19, %c0_20] : memref<1x128xf32, #tpu.memory_space<vmem>>, vector<1x128xf32>
    %25 = arith.truncf %22 : vector<16x128xf32> to vector<16x128xbf16>
    %cst_21 = arith.constant dense<0.000000e+00> : vector<16x128xf32>
    %26 = tpu.matmul %25, %23, %cst_21 {dimension_numbers = #tpu.dot_dimension_numbers<[1], [0], [0], [1], [0, 0, 1, 1], [], []>} : vector<16x128xbf16>, vector<128x128xbf16>, vector<16x128xf32> -> vector<16x128xf32>
    %27 = vector.broadcast %24 : vector<1x128xf32> to vector<16x128xf32>
    %28 = arith.addf %26, %27 : vector<16x128xf32>
    %29 = arith.truncf %28 : vector<16x128xf32> to vector<16x128xbf16>
    %c0_22 = arith.constant 0 : index
    %c0_23 = arith.constant 0 : index
    %30 = vector.load %arg10[%c0_22, %c0_23] : memref<16x128xbf16, #tpu.memory_space<vmem>>, vector<16x128xbf16>
    tpu.vector_store %arg10[%c0_22, %c0_23], %29 {strides = array<i32>} : memref<16x128xbf16, #tpu.memory_space<vmem>>, vector<16x128xbf16>,
    return
  }
  func.func @transform_0(%arg0: i32) -> (i32, i32) {
    %c0_i32 = arith.constant 0 : i32
    %c0_i32_0 = arith.constant 0 : i32
    return %arg0, %c0_i32 : i32, i32
  }
  func.func @transform_1(%arg0: i32) -> (i32, i32) {
    %c0_i32 = arith.constant 0 : i32
    %c0_i32_0 = arith.constant 0 : i32
    %c0_i32_1 = arith.constant 0 : i32
    return %c0_i32, %c0_i32_0 : i32, i32
  }
  func.func @transform_2(%arg0: i32) -> (i32, i32) {
    %c0_i32 = arith.constant 0 : i32
    %c0_i32_0 = arith.constant 0 : i32
    %c0_i32_1 = arith.constant 0 : i32
    return %c0_i32, %c0_i32_0 : i32, i32
  }
  func.func @transform_3(%arg0: i32) -> (i32, i32) {
    %c0_i32 = arith.constant 0 : i32
    %c0_i32_0 = arith.constant 0 : i32
    %c0_i32_1 = arith.constant 0 : i32
    return %c0_i32, %c0_i32_0 : i32, i32
  }
  func.func @transform_4(%arg0: i32) -> (i32, i32) {
    %c0_i32 = arith.constant 0 : i32
    %c0_i32_0 = arith.constant 0 : i32
    %c0_i32_1 = arith.constant 0 : i32
    return %c0_i32, %c0_i32_0 : i32, i32
  }
  func.func @transform_5(%arg0: i32) -> (i32, i32) {
    %c0_i32 = arith.constant 0 : i32
    %c0_i32_0 = arith.constant 0 : i32
    %c0_i32_1 = arith.constant 0 : i32
    return %c0_i32, %c0_i32_0 : i32, i32
  }
  func.func @transform_6(%arg0: i32) -> (i32, i32) {
    %c0_i32 = arith.constant 0 : i32
    %c0_i32_0 = arith.constant 0 : i32
    %c0_i32_1 = arith.constant 0 : i32
    return %c0_i32, %c0_i32_0 : i32, i32
  }
  func.func @transform_7(%arg0: i32) -> (i32, i32) {
    %c0_i32 = arith.constant 0 : i32
    %c0_i32_0 = arith.constant 0 : i32
    %c0_i32_1 = arith.constant 0 : i32
    return %c0_i32, %c0_i32_0 : i32, i32
  }
  func.func @transform_8(%arg0: i32) -> (i32, i32) {
    %c0_i32 = arith.constant 0 : i32
    %c0_i32_0 = arith.constant 0 : i32
    %c0_i32_1 = arith.constant 0 : i32
    return %c0_i32, %c0_i32_0 : i32, i32
  }
  func.func @transform_9(%arg0: i32) -> (i32, i32) {
    %c0_i32 = arith.constant 0 : i32
    %c0_i32_0 = arith.constant 0 : i32
    return %arg0, %c0_i32 : i32, i32
  }
}

</mosaic_0001>

<bundles_post_ra>
// kernel: tpu_custom_call.1
= control target key start
LH: loop header
LB: loop body
LE: loop exit
PB: predicated region body
PF: predicated region fallthrough
CT: control target
= control target key end

     0   :  { %14 = vsyncpa [#allocation3], 0  ;;  %s990_s0 = inlined_call_operand.hbm [shape: f32[16,32], index: 0, kind: input, shape index: {}]   ;;  %s991_s1 = inlined_call_operand.hbm [shape: bf16[32,128], index: 1, kind: input, shape index: {}]   ;;  %s992_s2 = inlined_call_operand.vmem [shape: f32[1,128], index: 2, kind: input, shape index: {}]   ;;  %s993_s3 = inlined_call_operand.hbm [shape: bf16[128,128], index: 3, kind: input, shape index: {}]   ;;  %s994_s4 = inlined_call_operand.vmem [shape: f32[1,128], index: 4, kind: input, shape index: {}]   ;;  %s995_s5 = inlined_call_operand.hbm [shape: bf16[128,128], index: 5, kind: input, shape index: {}]   ;;  %s996_s6 = inlined_call_operand.vmem [shape: f32[1,128], index: 6, kind: input, shape index: {}]   ;;  %s997_s7 = inlined_call_operand.hbm [shape: bf16[128,128], index: 7, kind: input, shape index: {}]   ;;  %s998_s8 = inlined_call_operand.vmem [shape: f32[1,128], index: 8, kind: input, shape index: {}]   ;;  %s999_s9 = inlined_call_operand.hbm [shape: bf16[16,128], index: 9, kind: output, shape index: {}]  }
   0x1   :  { %15 = vsyncpa [#allocation6], 0 }
   0x2   :  { %16 = vsyncpa [#allocation9], 0 }
   0x3   :  { %17 = vsyncpa [#allocation4], 0  ;;  %s849_s30 = smov [#allocation5]  }
   0x4   :  { %s35_s10 = sshll.u32 %s849_s30, 4  ;;  %s36_s10 = int_to_ptr.vmem [resolvable:$true] %s35_s10 }
   0x5   :  { %s729_s11 = scalar_lea.vmem %s36_s10, 256  ;;  %p734_p1 = scmp.lt.s32.totalorder %s36_s10, %s36_s10 }
   0x6   :  { %p730_p0 = scmp.ne.s32.totalorder %s36_s10, %s729_s11  ;;  %p735_p2 = scmp.lt.s32.totalorder %s729_s11, %s729_s11 }
   0x8   :  { %p736_p3 = por %p735_p2, %p734_p1 }
   0xa   :  { %p737_p4 = pnand %p736_p3, %p730_p0 }
   0xc   :  { %740 = shalt.err (!%p737_p4)
}
   0xd   :  { %s850_s12 = smov 64   ;;  %s851_s13 = smov 4  }
   0xe   :  { %41 = dma.hbm_to_vmem [thread:$0]  %s991_s1, 256, %s36_s10, [#allocation6], %s850_s12, %s850_s12, %s851_s13  }
   0xf   :  { %s852_s16 = smov [#allocation8]   ;;  %s853_s18 = smov [#allocation2]  }
  0x10   :  { %s63_s17 = sshll.u32 %s852_s16, 4  ;;  %s23_s19 = sshll.u32 %s853_s18, 4  ;;  %s64_s17 = int_to_ptr.vmem [resolvable:$true] %s63_s17  ;;  %s24_s19 = int_to_ptr.vmem [resolvable:$true] %s23_s19 }
  0x11   :  { %s749_s20 = scalar_lea.vmem %s64_s17, 1024  ;;  %p754_p6 = scmp.lt.s32.totalorder %s64_s17, %s64_s17 }
  0x12   :  { %p750_p5 = scmp.ne.s32.totalorder %s64_s17, %s749_s20  ;;  %p755_p7 = scmp.lt.s32.totalorder %s749_s20, %s749_s20 }
  0x14   :  { %p756_p8 = por %p755_p7, %p754_p6 }
  0x16   :  { %p757_p9 = pnand %p756_p8, %p750_p5 }
  0x18   :  { %760 = shalt.err (!%p757_p9)
}
  0x19   :  { %69 = dma.hbm_to_vmem [thread:$0]  %s995_s5, 1024, %s64_s17, [#allocation9], %s850_s12, %s850_s12, %s851_s13  }
  0x1a   :  { %s769_s1 = scalar_lea.vmem %s24_s19, 256  ;;  %p774_p11 = scmp.lt.s32.totalorder %s24_s19, %s24_s19 }
  0x1b   :  { %p770_p10 = scmp.ne.s32.totalorder %s24_s19, %s769_s1  ;;  %p775_p12 = scmp.lt.s32.totalorder %s769_s1, %s769_s1 }
  0x1d   :  { %p776_p13 = por %p775_p12, %p774_p11 }
  0x1f   :  { %p777_p0 = pnand %p776_p13, %p770_p10 }
  0x21   :  { %780 = shalt.err (!%p777_p0)
}
  0x22   :  { %s854_s23 = smov 128   ;;  %s855_s24 = smov 8  }
  0x23   :  { %29 = dma.hbm_to_vmem [thread:$0]  %s990_s0, 256, %s24_s19, [#allocation3], %s854_s23, %s854_s23, %s855_s24  }
  0x24   :  { %s856_s27 = smov [#allocation7]   ;;  %s857_s29 = smov [#allocation10]  }
  0x25   :  { %s49_s28 = sshll.u32 %s856_s27, 4  ;;  %s77_s30 = sshll.u32 %s857_s29, 4  ;;  %s50_s28 = int_to_ptr.vmem [resolvable:$true] %s49_s28  ;;  %s78_s30 = int_to_ptr.vmem [resolvable:$true] %s77_s30 }
  0x26   :  { %s789_s5 = scalar_lea.vmem %s50_s28, 1024  ;;  %p794_p2 = scmp.lt.s32.totalorder %s50_s28, %s50_s28 }
  0x27   :  { %p790_p1 = scmp.ne.s32.totalorder %s50_s28, %s789_s5  ;;  %p795_p3 = scmp.lt.s32.totalorder %s789_s5, %s789_s5 }
  0x29   :  { %p796_p4 = por %p795_p3, %p794_p2 }
  0x2b   :  { %p797_p5 = pnand %p796_p4, %p790_p1 }
  0x2d   :  { %800 = shalt.err (!%p797_p5)
}
  0x2e   :  { %55 = dma.hbm_to_vmem [thread:$0]  %s993_s3, 1024, %s50_s28, [#allocation6], %s850_s12, %s850_s12, %s851_s13  }
  0x2f   :  { %s809_s0 = scalar_lea.vmem %s78_s30, 1024  ;;  %p814_p7 = scmp.lt.s32.totalorder %s78_s30, %s78_s30 }
  0x30   :  { %p810_p6 = scmp.ne.s32.totalorder %s78_s30, %s809_s0  ;;  %p815_p8 = scmp.lt.s32.totalorder %s809_s0, %s809_s0 }
  0x32   :  { %p816_p9 = por %p815_p8, %p814_p7 }
  0x34   :  { %p817_p10 = pnand %p816_p9, %p810_p6 }
  0x36   :  { %820 = shalt.err (!%p817_p10)
}
  0x37   :  { %83 = dma.hbm_to_vmem [thread:$0]  %s997_s7, 1024, %s78_s30, [#allocation9], %s850_s12, %s850_s12, %s851_s13  }
  0x38   :  { %841 = dma.done.wait [#allocation3], 256  }
  0x39   :  { %842 = vsyncadd [#allocation3], 4294967040 }
  0x3a   :  { %843 = dma.done.wait [#allocation6], 1280  }
  0x3b   :  { %844 = vsyncadd [#allocation6], 4294966016 }
  0x3c   :  { %845 = dma.done.wait [#allocation9], 2048  }
  0x3d   :  { %846 = vsyncadd [#allocation9], 4294965248  ;;  %v858_v0 = vmov 0.0   ;;  %vm859_vm0 = vmmov 0   ;;  %v695_v1 = vld [vmem:[#allocation5 + $0x8] sm:$0xff]   ;;  %v696_v2 = vld [vmem:[#allocation5] sm:$0xff]  }
  0x3e   :  { %615 = vmatprep.subr.bf16.mxu0 %v858_v0  ;;  %619 = vmatprep.mubr.msk.bf16.mxu0 %vm859_vm0, %v858_v0  ;;  %v102_v3 = vld [vmem:[#allocation2] sm:$0xff]  ;;  %v103_v4 = vld [vmem:[#allocation2 + $0x8] sm:$0xff]  ;;  %v697_v5 = vld [vmem:[#allocation7 + $0x38] sm:$0xff]   ;;  %vm128_vm1 = vcmask 261120   ;;  %s860_s20 = smov [#allocation11]  }
  0x3f   :  { %623 = vmatprep.subr.bf16.mxu1 %v858_v0  ;;  %639 = vmatprep.mubr.msk.bf16.mxu1 %vm859_vm0, %v858_v0  ;;  %v109_v6 = vpack.c.bf16 %v103_v4, %v102_v3  ;;  %v698_v7 = vld [vmem:[#allocation7 + $0x30] sm:$0xff]   ;;  %v699_v8 = vld [vmem:[#allocation7 + $0x28] sm:$0xff]   ;;  %v700_v9 = vld [vmem:[#allocation7 + $0x20] sm:$0xff]   ;;  %s531_s21 = sshll.u32 %s860_s20, 4  ;;  %s532_s21 = int_to_ptr.vmem [resolvable:$true] %s531_s21 }
  0x40   :  { %616 = vmatpush3.bf16.msra.mxu0 %v695_v1  ;;  %624 = vmatpush3.bf16.msra.mxu1 %v697_v5  ;;  %v701_v10 = vld [vmem:[#allocation7 + $0x18] sm:$0xff]   ;;  %v702_v11 = vld [vmem:[#allocation7 + $0x10] sm:$0xff]   ;;  %v703_v12 = vld [vmem:[#allocation7 + $0x8] sm:$0xff]   ;;  %p826_p12 = scmp.lt.s32.totalorder %s532_s21, %s532_s21 }
  0x41   :  { %617 = vmatprep.subr.bf16.mxu0 %v858_v0  ;;  %625 = vmatprep.subr.bf16.mxu1 %v858_v0  ;;  %v704_v13 = vld [vmem:[#allocation7] sm:$0xff]   ;;  %v705_v14 = vld [vmem:[#allocation8 + $0x38] sm:$0xff]   ;;  %v706_v15 = vld [vmem:[#allocation8 + $0x30] sm:$0xff]  }
  0x42   :  { %v707_v16 = vld [vmem:[#allocation8 + $0x28] sm:$0xff]   ;;  %v708_v17 = vld [vmem:[#allocation8 + $0x20] sm:$0xff]   ;;  %v709_v18 = vld [vmem:[#allocation8 + $0x18] sm:$0xff]  }
  0x43   :  { %v545_v20 = vld [vmem:[%s992_s2] ss:$0 sm:$0xff]  ;;  %v710_v27 = vld [vmem:[#allocation8 + $0x10] sm:$0xff]   ;;  %v711_v28 = vld [vmem:[#allocation8 + $0x8] sm:$0xff]  }
  0x44   :  { %618 = vmatpush3.bf16.msra.mxu0 %v696_v2  ;;  %626 = vmatpush3.bf16.msra.mxu1 %v698_v7  ;;  %v712_v29 = vld [vmem:[#allocation8] sm:$0xff]   ;;  %v713_v30 = vld [vmem:[#allocation10 + $0x38] sm:$0xff]   ;;  %v714_v31 = vld [vmem:[#allocation10 + $0x30] sm:$0xff]  }
  0x45   :  { %643 = vmatprep.subr.bf16.mxu0 %v858_v0  ;;  %627 = vmatprep.subr.bf16.mxu1 %v858_v0  ;;  %v715_v32 = vld [vmem:[#allocation10 + $0x28] sm:$0xff]   ;;  %v716_v33 = vld [vmem:[#allocation10 + $0x20] sm:$0xff]   ;;  %v717_v34 = vld [vmem:[#allocation10 + $0x18] sm:$0xff]  }
  0x46   :  { %v549_v35 = vld [vmem:[%s994_s4] ss:$0 sm:$0xff]  ;;  %v718_v45 = vld [vmem:[#allocation10 + $0x10] sm:$0xff]   ;;  %v719_v46 = vld [vmem:[#allocation10 + $0x8] sm:$0xff]  }
  0x47   :  { %620 = vmatmul.mubr.msk.bf16.vlgmr.msra.gmra.mxu0 %vm128_vm1, %v109_v6  ;;  %v720_v47 = vld [vmem:[#allocation10] sm:$0xff]  }
  0x48   :  { %659 = vmatprep.mubr.msk.bf16.mxu0 %vm859_vm0, %v858_v0  ;;  %628 = vmatpush3.bf16.msra.mxu1 %v699_v8  ;;  %v558_v48 = vld [vmem:[%s996_s6] ss:$0 sm:$0xff]  ;;  %s821_s6 = scalar_lea.vmem %s532_s21, 128 }
  0x49   :  { %629 = vmatprep.subr.bf16.mxu1 %v858_v0  ;;  %644 = vmatpush3.bf16.msra.mxu0 %v705_v14  ;;  %v567_v59 = vld [vmem:[%s998_s8] ss:$0 sm:$0xff]  ;;  %p822_p11 = scmp.ne.s32.totalorder %s532_s21, %s821_s6  ;;  %p827_p13 = scmp.lt.s32.totalorder %s821_s6, %s821_s6 }
  0x4a   :  { %645 = vmatprep.subr.bf16.mxu0 %v858_v0 }
  0x4b   :  { %p828_p0 = por %p827_p13, %p826_p12 }
  0x4c   :  { %630 = vmatpush3.bf16.msra.mxu1 %v700_v9 }
  0x4d   :  { %631 = vmatprep.subr.bf16.mxu1 %v858_v0  ;;  %646 = vmatpush3.bf16.msra.mxu0 %v706_v15  ;;  %p829_p1 = pnand %p828_p0, %p822_p11 }
  0x4e   :  { %647 = vmatprep.subr.bf16.mxu0 %v858_v0 }
  0x50   :  { %632 = vmatpush3.bf16.msra.mxu1 %v701_v10 }
  0x51   :  { %633 = vmatprep.subr.bf16.mxu1 %v858_v0  ;;  %648 = vmatpush3.bf16.msra.mxu0 %v707_v16 }
  0x52   :  { %649 = vmatprep.subr.bf16.mxu0 %v858_v0 }
  0x54   :  { %634 = vmatpush3.bf16.msra.mxu1 %v702_v11 }
  0x55   :  { %635 = vmatprep.subr.bf16.mxu1 %v858_v0  ;;  %650 = vmatpush3.bf16.msra.mxu0 %v708_v17 }
  0x56   :  { %651 = vmatprep.subr.bf16.mxu0 %v858_v0 }
  0x58   :  { %636 = vmatpush3.bf16.msra.mxu1 %v703_v12 }
  0x59   :  { %637 = vmatprep.subr.bf16.mxu1 %v858_v0  ;;  %652 = vmatpush3.bf16.msra.mxu0 %v709_v18 }
  0x5a   :  { %653 = vmatprep.subr.bf16.mxu0 %v858_v0 }
  0x5c   :  { %638 = vmatpush3.bf16.msra.mxu1 %v704_v13 }
  0x5d   :  { %663 = vmatprep.subr.bf16.mxu1 %v858_v0  ;;  %654 = vmatpush3.bf16.msra.mxu0 %v710_v27 }
  0x5e   :  { %655 = vmatprep.subr.bf16.mxu0 %v858_v0 }
  0x61   :  { %656 = vmatpush3.bf16.msra.mxu0 %v711_v28 }
  0x62   :  { %657 = vmatprep.subr.bf16.mxu0 %v858_v0 }
  0x65   :  { %658 = vmatpush3.bf16.msra.mxu0 %v712_v29 }
 0x107   :  { %v166_v19 = vpop.f32.mrf.mxu0 }
 0x108   :  { %v167_v23 = vadd.f32 %v545_v20, %v166_v19 }
 0x109   :  { %v621_v21 = vpop.f32.mrf.mxu0 }
 0x10b   :  { %v169_v22 = vpop.f32.mrf.mxu0 }
 0x10c   :  { %v170_v24 = vadd.f32 %v545_v20, %v169_v22 }
 0x10d   :  { %v622_v25 = vpop.f32.mrf.mxu0 }
 0x10e   :  { %v190_v26 = vpack.c.bf16 %v170_v24, %v167_v23 }
 0x110   :  { %640 = vmatmul.mubr.bf16.vlgmr.msra.gmra.mxu1 %v190_v26 }
 0x111   :  { %679 = vmatprep.mubr.msk.bf16.mxu1 %vm859_vm0, %v858_v0  ;;  %664 = vmatpush3.bf16.msra.mxu1 %v713_v30 }
 0x112   :  { %665 = vmatprep.subr.bf16.mxu1 %v858_v0 }
 0x115   :  { %666 = vmatpush3.bf16.msra.mxu1 %v714_v31 }
 0x116   :  { %667 = vmatprep.subr.bf16.mxu1 %v858_v0 }
 0x119   :  { %668 = vmatpush3.bf16.msra.mxu1 %v715_v32 }
 0x11a   :  { %669 = vmatprep.subr.bf16.mxu1 %v858_v0 }
 0x11d   :  { %670 = vmatpush3.bf16.msra.mxu1 %v716_v33 }
 0x11e   :  { %671 = vmatprep.subr.bf16.mxu1 %v858_v0 }
 0x121   :  { %672 = vmatpush3.bf16.msra.mxu1 %v717_v34 }
 0x122   :  { %673 = vmatprep.subr.bf16.mxu1 %v858_v0 }
 0x125   :  { %674 = vmatpush3.bf16.msra.mxu1 %v718_v45 }
 0x126   :  { %675 = vmatprep.subr.bf16.mxu1 %v858_v0 }
 0x129   :  { %676 = vmatpush3.bf16.msra.mxu1 %v719_v46 }
 0x12a   :  { %677 = vmatprep.subr.bf16.mxu1 %v858_v0 }
 0x12d   :  { %678 = vmatpush3.bf16.msra.mxu1 %v720_v47 }
 0x1d0   :  { %v279_v36 = vpop.f32.mrf.mxu1 }
 0x1d1   :  { %v280_v38 = vadd.f32 %v549_v35, %v279_v36 }
 0x1d2   :  { %v641_v37 = vpop.f32.mrf.mxu1 }
 0x1d3   :  { %v286_v42 = vmax.f32 %v280_v38, 0.0 }
 0x1d4   :  { %v282_v39 = vpop.f32.mrf.mxu1 }
 0x1d5   :  { %v283_v40 = vadd.f32 %v549_v35, %v282_v39 }
 0x1d6   :  { %v642_v41 = vpop.f32.mrf.mxu1 }
 0x1d7   :  { %v287_v43 = vmax.f32 %v283_v40, 0.0 }
 0x1d9   :  { %v305_v44 = vpack.c.bf16 %v287_v43, %v286_v42 }
 0x1db   :  { %660 = vmatmul.mubr.bf16.vlgmr.msra.gmra.mxu0 %v305_v44 }
 0x29b   :  { %v394_v49 = vpop.f32.mrf.mxu0 }
 0x29c   :  { %v395_v51 = vadd.f32 %v558_v48, %v394_v49 }
 0x29d   :  { %v661_v50 = vpop.f32.mrf.mxu0 }
 0x29e   :  { %v401_v55 = vmax.f32 %v395_v51, 0.0 }
 0x29f   :  { %v397_v52 = vpop.f32.mrf.mxu0 }
 0x2a0   :  { %v398_v53 = vadd.f32 %v558_v48, %v397_v52 }
 0x2a1   :  { %v662_v54 = vpop.f32.mrf.mxu0 }
 0x2a2   :  { %v402_v56 = vmax.f32 %v398_v53, 0.0 }
 0x2a4   :  { %v420_v57 = vpack.c.bf16 %v402_v56, %v401_v55 }
 0x2a6   :  { %680 = vmatmul.mubr.bf16.vlgmr.msra.gmra.mxu1 %v420_v57 }
 0x366   :  { %v509_v58 = vpop.f32.mrf.mxu1 }
 0x367   :  { %v510_v62 = vadd.f32 %v567_v59, %v509_v58 }
 0x368   :  { %v681_v60 = vpop.f32.mrf.mxu1 }
 0x36a   :  { %v512_v61 = vpop.f32.mrf.mxu1 }
 0x36b   :  { %v513_v63 = vadd.f32 %v567_v59, %v512_v61 }
 0x36c   :  { %v682_v0 = vpop.f32.mrf.mxu1 }
 0x36d   :  { %v583_v1 = vpack.c.bf16 %v513_v63, %v510_v62 }
 0x36f   :  { %584 = vst [vmem:[#allocation11] sm:$0xff] %v583_v1  }
 0x370   :  { %832 = shalt.err (!%p829_p1)
}
 0x371   :  { %537 = dma.vmem_to_hbm [thread:$0]  %s532_s21, 128, %s999_s9, [#allocation4], %s850_s12, %s850_s12, %s851_s13  }
 0x372   :  { %847 = dma.done.wait [#allocation4], 128  }
 0x373   :  { %848 = vsyncadd [#allocation4], 4294967168 }
 0x374   :  { %541 = vsyncpa [#allocation3], 1 }
 0x375   :  { %542 = vsyncpa [#allocation6], 1 }
 0x376   :  { %543 = vsyncpa [#allocation9], 1 }
 0x377   :  { %544 = vsyncpa [#allocation4], 1 }

// kernel: tpu_custom_call.1
= control target key start
LH: loop header
LB: loop body
LE: loop exit
PB: predicated region body
PF: predicated region fallthrough
CT: control target
= control target key end

     0   :  { %14 = vsyncpa [#allocation3], 0  ;;  %s990_s0 = inlined_call_operand.hbm [shape: f32[16,32], index: 0, kind: input, shape index: {}]   ;;  %s991_s1 = inlined_call_operand.hbm [shape: bf16[32,128], index: 1, kind: input, shape index: {}]   ;;  %s992_s2 = inlined_call_operand.vmem [shape: f32[1,128], index: 2, kind: input, shape index: {}]   ;;  %s993_s3 = inlined_call_operand.hbm [shape: bf16[128,128], index: 3, kind: input, shape index: {}]   ;;  %s994_s4 = inlined_call_operand.vmem [shape: f32[1,128], index: 4, kind: input, shape index: {}]   ;;  %s995_s5 = inlined_call_operand.hbm [shape: bf16[128,128], index: 5, kind: input, shape index: {}]   ;;  %s996_s6 = inlined_call_operand.vmem [shape: f32[1,128], index: 6, kind: input, shape index: {}]   ;;  %s997_s7 = inlined_call_operand.hbm [shape: bf16[128,128], index: 7, kind: input, shape index: {}]   ;;  %s998_s8 = inlined_call_operand.vmem [shape: f32[1,128], index: 8, kind: input, shape index: {}]   ;;  %s999_s9 = inlined_call_operand.hbm [shape: bf16[16,128], index: 9, kind: output, shape index: {}]  }
   0x1   :  { %15 = vsyncpa [#allocation6], 0 }
   0x2   :  { %16 = vsyncpa [#allocation9], 0 }
   0x3   :  { %17 = vsyncpa [#allocation4], 0  ;;  %s849_s30 = smov [#allocation5]  }
   0x4   :  { %s35_s10 = sshll.u32 %s849_s30, 4  ;;  %s36_s10 = int_to_ptr.vmem [resolvable:$true] %s35_s10 }
   0x5   :  { %s729_s11 = scalar_lea.vmem %s36_s10, 256  ;;  %p734_p1 = scmp.lt.s32.totalorder %s36_s10, %s36_s10 }
   0x6   :  { %p730_p0 = scmp.ne.s32.totalorder %s36_s10, %s729_s11  ;;  %p735_p2 = scmp.lt.s32.totalorder %s729_s11, %s729_s11 }
   0x8   :  { %p736_p3 = por %p735_p2, %p734_p1 }
   0xa   :  { %p737_p4 = pnand %p736_p3, %p730_p0 }
   0xc   :  { %740 = shalt.err (!%p737_p4)
}
   0xd   :  { %s850_s12 = smov 64   ;;  %s851_s13 = smov 4  }
   0xe   :  { %41 = dma.hbm_to_vmem [thread:$0]  %s991_s1, 256, %s36_s10, [#allocation6], %s850_s12, %s850_s12, %s851_s13  }
   0xf   :  { %s852_s16 = smov [#allocation8]   ;;  %s853_s18 = smov [#allocation2]  }
  0x10   :  { %s63_s17 = sshll.u32 %s852_s16, 4  ;;  %s23_s19 = sshll.u32 %s853_s18, 4  ;;  %s64_s17 = int_to_ptr.vmem [resolvable:$true] %s63_s17  ;;  %s24_s19 = int_to_ptr.vmem [resolvable:$true] %s23_s19 }
  0x11   :  { %s749_s20 = scalar_lea.vmem %s64_s17, 1024  ;;  %p754_p6 = scmp.lt.s32.totalorder %s64_s17, %s64_s17 }
  0x12   :  { %p750_p5 = scmp.ne.s32.totalorder %s64_s17, %s749_s20  ;;  %p755_p7 = scmp.lt.s32.totalorder %s749_s20, %s749_s20 }
  0x14   :  { %p756_p8 = por %p755_p7, %p754_p6 }
  0x16   :  { %p757_p9 = pnand %p756_p8, %p750_p5 }
  0x18   :  { %760 = shalt.err (!%p757_p9)
}
  0x19   :  { %69 = dma.hbm_to_vmem [thread:$0]  %s995_s5, 1024, %s64_s17, [#allocation9], %s850_s12, %s850_s12, %s851_s13  }
  0x1a   :  { %s769_s1 = scalar_lea.vmem %s24_s19, 256  ;;  %p774_p11 = scmp.lt.s32.totalorder %s24_s19, %s24_s19 }
  0x1b   :  { %p770_p10 = scmp.ne.s32.totalorder %s24_s19, %s769_s1  ;;  %p775_p12 = scmp.lt.s32.totalorder %s769_s1, %s769_s1 }
  0x1d   :  { %p776_p13 = por %p775_p12, %p774_p11 }
  0x1f   :  { %p777_p0 = pnand %p776_p13, %p770_p10 }
  0x21   :  { %780 = shalt.err (!%p777_p0)
}
  0x22   :  { %s854_s23 = smov 128   ;;  %s855_s24 = smov 8  }
  0x23   :  { %29 = dma.hbm_to_vmem [thread:$0]  %s990_s0, 256, %s24_s19, [#allocation3], %s854_s23, %s854_s23, %s855_s24  }
  0x24   :  { %s856_s27 = smov [#allocation7]   ;;  %s857_s29 = smov [#allocation10]  }
  0x25   :  { %s49_s28 = sshll.u32 %s856_s27, 4  ;;  %s77_s30 = sshll.u32 %s857_s29, 4  ;;  %s50_s28 = int_to_ptr.vmem [resolvable:$true] %s49_s28  ;;  %s78_s30 = int_to_ptr.vmem [resolvable:$true] %s77_s30 }
  0x26   :  { %s789_s5 = scalar_lea.vmem %s50_s28, 1024  ;;  %p794_p2 = scmp.lt.s32.totalorder %s50_s28, %s50_s28 }
  0x27   :  { %p790_p1 = scmp.ne.s32.totalorder %s50_s28, %s789_s5  ;;  %p795_p3 = scmp.lt.s32.totalorder %s789_s5, %s789_s5 }
  0x29   :  { %p796_p4 = por %p795_p3, %p794_p2 }
  0x2b   :  { %p797_p5 = pnand %p796_p4, %p790_p1 }
  0x2d   :  { %800 = shalt.err (!%p797_p5)
}
  0x2e   :  { %55 = dma.hbm_to_vmem [thread:$0]  %s993_s3, 1024, %s50_s28, [#allocation6], %s850_s12, %s850_s12, %s851_s13  }
  0x2f   :  { %s809_s0 = scalar_lea.vmem %s78_s30, 1024  ;;  %p814_p7 = scmp.lt.s32.totalorder %s78_s30, %s78_s30 }
  0x30   :  { %p810_p6 = scmp.ne.s32.totalorder %s78_s30, %s809_s0  ;;  %p815_p8 = scmp.lt.s32.totalorder %s809_s0, %s809_s0 }
  0x32   :  { %p816_p9 = por %p815_p8, %p814_p7 }
  0x34   :  { %p817_p10 = pnand %p816_p9, %p810_p6 }
  0x36   :  { %820 = shalt.err (!%p817_p10)
}
  0x37   :  { %83 = dma.hbm_to_vmem [thread:$0]  %s997_s7, 1024, %s78_s30, [#allocation9], %s850_s12, %s850_s12, %s851_s13  }
  0x38   :  { %841 = dma.done.wait [#allocation3], 256  }
  0x39   :  { %842 = vsyncadd [#allocation3], 4294967040 }
  0x3a   :  { %843 = dma.done.wait [#allocation6], 1280  }
  0x3b   :  { %844 = vsyncadd [#allocation6], 4294966016 }
  0x3c   :  { %845 = dma.done.wait [#allocation9], 2048  }
  0x3d   :  { %846 = vsyncadd [#allocation9], 4294965248  ;;  %v858_v0 = vmov 0.0   ;;  %vm859_vm0 = vmmov 0   ;;  %v695_v1 = vld [vmem:[#allocation5 + $0x8] sm:$0xff]   ;;  %v696_v2 = vld [vmem:[#allocation5] sm:$0xff]  }
  0x3e   :  { %615 = vmatprep.subr.bf16.mxu0 %v858_v0  ;;  %619 = vmatprep.mubr.msk.bf16.mxu0 %vm859_vm0, %v858_v0  ;;  %v102_v3 = vld [vmem:[#allocation2] sm:$0xff]  ;;  %v103_v4 = vld [vmem:[#allocation2 + $0x8] sm:$0xff]  ;;  %v697_v5 = vld [vmem:[#allocation7 + $0x38] sm:$0xff]   ;;  %vm128_vm1 = vcmask 261120   ;;  %s860_s20 = smov [#allocation11]  }
  0x3f   :  { %623 = vmatprep.subr.bf16.mxu1 %v858_v0  ;;  %639 = vmatprep.mubr.msk.bf16.mxu1 %vm859_vm0, %v858_v0  ;;  %v109_v6 = vpack.c.bf16 %v103_v4, %v102_v3  ;;  %v698_v7 = vld [vmem:[#allocation7 + $0x30] sm:$0xff]   ;;  %v699_v8 = vld [vmem:[#allocation7 + $0x28] sm:$0xff]   ;;  %v700_v9 = vld [vmem:[#allocation7 + $0x20] sm:$0xff]   ;;  %s531_s21 = sshll.u32 %s860_s20, 4  ;;  %s532_s21 = int_to_ptr.vmem [resolvable:$true] %s531_s21 }
  0x40   :  { %616 = vmatpush3.bf16.msra.mxu0 %v695_v1  ;;  %624 = vmatpush3.bf16.msra.mxu1 %v697_v5  ;;  %v701_v10 = vld [vmem:[#allocation7 + $0x18] sm:$0xff]   ;;  %v702_v11 = vld [vmem:[#allocation7 + $0x10] sm:$0xff]   ;;  %v703_v12 = vld [vmem:[#allocation7 + $0x8] sm:$0xff]   ;;  %p826_p12 = scmp.lt.s32.totalorder %s532_s21, %s532_s21 }
  0x41   :  { %617 = vmatprep.subr.bf16.mxu0 %v858_v0  ;;  %625 = vmatprep.subr.bf16.mxu1 %v858_v0  ;;  %v704_v13 = vld [vmem:[#allocation7] sm:$0xff]   ;;  %v705_v14 = vld [vmem:[#allocation8 + $0x38] sm:$0xff]   ;;  %v706_v15 = vld [vmem:[#allocation8 + $0x30] sm:$0xff]  }
  0x42   :  { %v707_v16 = vld [vmem:[#allocation8 + $0x28] sm:$0xff]   ;;  %v708_v17 = vld [vmem:[#allocation8 + $0x20] sm:$0xff]   ;;  %v709_v18 = vld [vmem:[#allocation8 + $0x18] sm:$0xff]  }
  0x43   :  { %v545_v20 = vld [vmem:[%s992_s2] ss:$0 sm:$0xff]  ;;  %v710_v27 = vld [vmem:[#allocation8 + $0x10] sm:$0xff]   ;;  %v711_v28 = vld [vmem:[#allocation8 + $0x8] sm:$0xff]  }
  0x44   :  { %618 = vmatpush3.bf16.msra.mxu0 %v696_v2  ;;  %626 = vmatpush3.bf16.msra.mxu1 %v698_v7  ;;  %v712_v29 = vld [vmem:[#allocation8] sm:$0xff]   ;;  %v713_v30 = vld [vmem:[#allocation10 + $0x38] sm:$0xff]   ;;  %v714_v31 = vld [vmem:[#allocation10 + $0x30] sm:$0xff]  }
  0x45   :  { %643 = vmatprep.subr.bf16.mxu0 %v858_v0  ;;  %627 = vmatprep.subr.bf16.mxu1 %v858_v0  ;;  %v715_v32 = vld [vmem:[#allocation10 + $0x28] sm:$0xff]   ;;  %v716_v33 = vld [vmem:[#allocation10 + $0x20] sm:$0xff]   ;;  %v717_v34 = vld [vmem:[#allocation10 + $0x18] sm:$0xff]  }
  0x46   :  { %v549_v35 = vld [vmem:[%s994_s4] ss:$0 sm:$0xff]  ;;  %v718_v45 = vld [vmem:[#allocation10 + $0x10] sm:$0xff]   ;;  %v719_v46 = vld [vmem:[#allocation10 + $0x8] sm:$0xff]  }
  0x47   :  { %620 = vmatmul.mubr.msk.bf16.vlgmr.msra.gmra.mxu0 %vm128_vm1, %v109_v6  ;;  %v720_v47 = vld [vmem:[#allocation10] sm:$0xff]  }
  0x48   :  { %659 = vmatprep.mubr.msk.bf16.mxu0 %vm859_vm0, %v858_v0  ;;  %628 = vmatpush3.bf16.msra.mxu1 %v699_v8  ;;  %v558_v48 = vld [vmem:[%s996_s6] ss:$0 sm:$0xff]  ;;  %s821_s6 = scalar_lea.vmem %s532_s21, 128 }
  0x49   :  { %629 = vmatprep.subr.bf16.mxu1 %v858_v0  ;;  %644 = vmatpush3.bf16.msra.mxu0 %v705_v14  ;;  %v567_v59 = vld [vmem:[%s998_s8] ss:$0 sm:$0xff]  ;;  %p822_p11 = scmp.ne.s32.totalorder %s532_s21, %s821_s6  ;;  %p827_p13 = scmp.lt.s32.totalorder %s821_s6, %s821_s6 }
  0x4a   :  { %645 = vmatprep.subr.bf16.mxu0 %v858_v0 }
  0x4b   :  { %p828_p0 = por %p827_p13, %p826_p12 }
  0x4c   :  { %630 = vmatpush3.bf16.msra.mxu1 %v700_v9 }
  0x4d   :  { %631 = vmatprep.subr.bf16.mxu1 %v858_v0  ;;  %646 = vmatpush3.bf16.msra.mxu0 %v706_v15  ;;  %p829_p1 = pnand %p828_p0, %p822_p11 }
  0x4e   :  { %647 = vmatprep.subr.bf16.mxu0 %v858_v0 }
  0x50   :  { %632 = vmatpush3.bf16.msra.mxu1 %v701_v10 }
  0x51   :  { %633 = vmatprep.subr.bf16.mxu1 %v858_v0  ;;  %648 = vmatpush3.bf16.msra.mxu0 %v707_v16 }
  0x52   :  { %649 = vmatprep.subr.bf16.mxu0 %v858_v0 }
  0x54   :  { %634 = vmatpush3.bf16.msra.mxu1 %v702_v11 }
  0x55   :  { %635 = vmatprep.subr.bf16.mxu1 %v858_v0  ;;  %650 = vmatpush3.bf16.msra.mxu0 %v708_v17 }
  0x56   :  { %651 = vmatprep.subr.bf16.mxu0 %v858_v0 }
  0x58   :  { %636 = vmatpush3.bf16.msra.mxu1 %v703_v12 }
  0x59   :  { %637 = vmatprep.subr.bf16.mxu1 %v858_v0  ;;  %652 = vmatpush3.bf16.msra.mxu0 %v709_v18 }
  0x5a   :  { %653 = vmatprep.subr.bf16.mxu0 %v858_v0 }
  0x5c   :  { %638 = vmatpush3.bf16.msra.mxu1 %v704_v13 }
  0x5d   :  { %663 = vmatprep.subr.bf16.mxu1 %v858_v0  ;;  %654 = vmatpush3.bf16.msra.mxu0 %v710_v27 }
  0x5e   :  { %655 = vmatprep.subr.bf16.mxu0 %v858_v0 }
  0x61   :  { %656 = vmatpush3.bf16.msra.mxu0 %v711_v28 }
  0x62   :  { %657 = vmatprep.subr.bf16.mxu0 %v858_v0 }
  0x65   :  { %658 = vmatpush3.bf16.msra.mxu0 %v712_v29 }
 0x107   :  { %v166_v19 = vpop.f32.mrf.mxu0 }
 0x108   :  { %v167_v23 = vadd.f32 %v545_v20, %v166_v19 }
 0x109   :  { %v621_v21 = vpop.f32.mrf.mxu0 }
 0x10b   :  { %v169_v22 = vpop.f32.mrf.mxu0 }
 0x10c   :  { %v170_v24 = vadd.f32 %v545_v20, %v169_v22 }
 0x10d   :  { %v622_v25 = vpop.f32.mrf.mxu0 }
 0x10e   :  { %v190_v26 = vpack.c.bf16 %v170_v24, %v167_v23 }
 0x110   :  { %640 = vmatmul.mubr.bf16.vlgmr.msra.gmra.mxu1 %v190_v26 }
 0x111   :  { %679 = vmatprep.mubr.msk.bf16.mxu1 %vm859_vm0, %v858_v0  ;;  %664 = vmatpush3.bf16.msra.mxu1 %v713_v30 }
 0x112   :  { %665 = vmatprep.subr.bf16.mxu1 %v858_v0 }
 0x115   :  { %666 = vmatpush3.bf16.msra.mxu1 %v714_v31 }
 0x116   :  { %667 = vmatprep.subr.bf16.mxu1 %v858_v0 }
 0x119   :  { %668 = vmatpush3.bf16.msra.mxu1 %v715_v32 }
 0x11a   :  { %669 = vmatprep.subr.bf16.mxu1 %v858_v0 }
 0x11d   :  { %670 = vmatpush3.bf16.msra.mxu1 %v716_v33 }
 0x11e   :  { %671 = vmatprep.subr.bf16.mxu1 %v858_v0 }
 0x121   :  { %672 = vmatpush3.bf16.msra.mxu1 %v717_v34 }
 0x122   :  { %673 = vmatprep.subr.bf16.mxu1 %v858_v0 }
 0x125   :  { %674 = vmatpush3.bf16.msra.mxu1 %v718_v45 }
 0x126   :  { %675 = vmatprep.subr.bf16.mxu1 %v858_v0 }
 0x129   :  { %676 = vmatpush3.bf16.msra.mxu1 %v719_v46 }
 0x12a   :  { %677 = vmatprep.subr.bf16.mxu1 %v858_v0 }
 0x12d   :  { %678 = vmatpush3.bf16.msra.mxu1 %v720_v47 }
 0x1d0   :  { %v279_v36 = vpop.f32.mrf.mxu1 }
 0x1d1   :  { %v280_v38 = vadd.f32 %v549_v35, %v279_v36 }
 0x1d2   :  { %v641_v37 = vpop.f32.mrf.mxu1 }
 0x1d3   :  { %v286_v42 = vmax.f32 %v280_v38, 0.0 }
 0x1d4   :  { %v282_v39 = vpop.f32.mrf.mxu1 }
 0x1d5   :  { %v283_v40 = vadd.f32 %v549_v35, %v282_v39 }
 0x1d6   :  { %v642_v41 = vpop.f32.mrf.mxu1 }
 0x1d7   :  { %v287_v43 = vmax.f32 %v283_v40, 0.0 }
 0x1d9   :  { %v305_v44 = vpack.c.bf16 %v287_v43, %v286_v42 }
 0x1db   :  { %660 = vmatmul.mubr.bf16.vlgmr.msra.gmra.mxu0 %v305_v44 }
 0x29b   :  { %v394_v49 = vpop.f32.mrf.mxu0 }
 0x29c   :  { %v395_v51 = vadd.f32 %v558_v48, %v394_v49 }
 0x29d   :  { %v661_v50 = vpop.f32.mrf.mxu0 }
 0x29e   :  { %v401_v55 = vmax.f32 %v395_v51, 0.0 }
 0x29f   :  { %v397_v52 = vpop.f32.mrf.mxu0 }
 0x2a0   :  { %v398_v53 = vadd.f32 %v558_v48, %v397_v52 }
 0x2a1   :  { %v662_v54 = vpop.f32.mrf.mxu0 }
 0x2a2   :  { %v402_v56 = vmax.f32 %v398_v53, 0.0 }
 0x2a4   :  { %v420_v57 = vpack.c.bf16 %v402_v56, %v401_v55 }
 0x2a6   :  { %680 = vmatmul.mubr.bf16.vlgmr.msra.gmra.mxu1 %v420_v57 }
 0x366   :  { %v509_v58 = vpop.f32.mrf.mxu1 }
 0x367   :  { %v510_v62 = vadd.f32 %v567_v59, %v509_v58 }
 0x368   :  { %v681_v60 = vpop.f32.mrf.mxu1 }
 0x36a   :  { %v512_v61 = vpop.f32.mrf.mxu1 }
 0x36b   :  { %v513_v63 = vadd.f32 %v567_v59, %v512_v61 }
 0x36c   :  { %v682_v0 = vpop.f32.mrf.mxu1 }
 0x36d   :  { %v583_v1 = vpack.c.bf16 %v513_v63, %v510_v62 }
 0x36f   :  { %584 = vst [vmem:[#allocation11] sm:$0xff] %v583_v1  }
 0x370   :  { %832 = shalt.err (!%p829_p1)
}
 0x371   :  { %537 = dma.vmem_to_hbm [thread:$0]  %s532_s21, 128, %s999_s9, [#allocation4], %s850_s12, %s850_s12, %s851_s13  }
 0x372   :  { %847 = dma.done.wait [#allocation4], 128  }
 0x373   :  { %848 = vsyncadd [#allocation4], 4294967168 }
 0x374   :  { %541 = vsyncpa [#allocation3], 1 }
 0x375   :  { %542 = vsyncpa [#allocation6], 1 }
 0x376   :  { %543 = vsyncpa [#allocation9], 1 }
 0x377   :  { %544 = vsyncpa [#allocation4], 1 }

</bundles_post_ra>
